<compile_context>
chip_gen: v5e
topology: v5e:2x2
jax: 0.10.0
libtpu: 0.0.40
codegen_flags: <defaults>
</compile_context>

<pallas_src>
import jax
import jax.numpy as jnp
from jax.experimental import pallas as pl
from jax.experimental.pallas import tpu as pltpu

MIN_VALUE = 0.2   # self.min_value
MAX_VALUE = 0.3   # self.max_value
STRIDE = 3
PAD = 4
KH = 3
KW = 3
COUT = 3


def _round_up(v, m):
    return ((v + m - 1) // m) * m


def _conv_clamp_kernel(x_ref, col_ref, roww_ref, bias_ref, x2_ref, o_ref):
    """One grid step processes a lane-packed block of B batch images.

    x_ref   : (1, H_pad, B*W)       f32 VMEM  input rows, lane index = b*W + w
    col_ref : (KW, B*W, B*OW)       f32 VMEM  one-hot column-gather matrices (constants)
    roww_ref: (KW, COUT*OH, H_pad)  f32 VMEM  row-gather matrices with conv weights folded in
    bias_ref: (COUT*OH, 1)          f32 VMEM  bias replicated over output rows
    x2_ref  : (1,)                  f32 SMEM  runtime clamp_min threshold
    o_ref   : (1, COUT*OH, B*OW)    f32 VMEM  lane-packed output (single store)
    """
    f32 = jnp.float32
    x = x_ref[0]                                                 # (H_pad, B*W)
    acc = None
    for kw in range(KW):                                         # unrolled at trace time (KW = 3)
        # One-hot column gather (exact copies; zero padding = "no column matches").
        y = jnp.dot(x, col_ref[kw], preferred_element_type=f32)        # (H_pad, B*OW)
        # Row gather + kh/channel weight contraction, folded into a single matmul.
        t = jnp.dot(roww_ref[kw], y, preferred_element_type=f32)       # (COUT*OH, B*OW)
        acc = t if acc is None else acc + t
    acc = acc + bias_ref[...]                                    # broadcast over lanes
    # clamp_min(min_value) . clamp_min(x2) == clamp_min(max(min_value, x2))  (max is associative)
    lo = jnp.maximum(f32(MIN_VALUE), x2_ref[0])
    o_ref[0] = jnp.minimum(jnp.maximum(acc, lo), f32(MAX_VALUE))


def _col_gather_mats(B, W, OW):
    """C[kw, b*W + w, b2*OW + ow] = (b == b2) & (w == STRIDE*ow + kw - PAD)."""
    kw = jnp.arange(KW, dtype=jnp.int32)[:, None, None]
    src = jnp.arange(B * W, dtype=jnp.int32)[None, :, None]
    dst = jnp.arange(B * OW, dtype=jnp.int32)[None, None, :]
    hit = ((src // W) == (dst // OW)) & ((src % W) == STRIDE * (dst % OW) + kw - PAD)
    return hit.astype(jnp.float32)                               # (KW, B*W, B*OW)


def _row_weight_mats(weight, H, H_pad, OH):
    """Rw[kw, c*OH + oh, h] = sum_kh weight[c,0,kh,kw] * [h == STRIDE*oh + kh - PAD and h < H]."""
    kh = jnp.arange(KH, dtype=jnp.int32)[:, None, None]
    oh = jnp.arange(OH, dtype=jnp.int32)[None, :, None]
    h = jnp.arange(H_pad, dtype=jnp.int32)[None, None, :]
    sel = ((h == STRIDE * oh + kh - PAD) & (h < H)).astype(jnp.float32)   # (KH, OH, H_pad)
    w2 = weight.reshape(COUT, KH, KW).astype(jnp.float32)                 # (COUT, KH, KW)
    rw = jnp.einsum("ckj,koh->jcoh", w2, sel)                             # (KW, COUT, OH, H_pad)
    return rw.reshape(KW, COUT * OH, H_pad)


def model_forward(x1, x2, weight, bias):
    """x1: (N, 1, H, W) NCHW; x2: scalar; weight: (3, 1, 3, 3) OIHW; bias: (3,).
       Returns (N, 3, OH, OW) float32, matching the PyTorch module forward."""
    N, Cin, H, W = x1.shape
    assert Cin == 1 and weight.shape == (COUT, 1, KH, KW)
    OH = (H + 2 * PAD - KH) // STRIDE + 1
    OW = (W + 2 * PAD - KW) // STRIDE + 1
    H_pad = _round_up(H, 8)                       # sublane-aligned row count

    # Batch blocking: pack B images along the lane axis so the output last dim is B*OW
    # (>= 128 lanes when N allows); cap the number of ~0.35us grid steps at ~8, which also
    # keeps a multi-step parallel axis (v7x 2-TC sharding) for large N.
    b_lane = pl.cdiv(128, OW)
    B = min(N, max(b_lane, pl.cdiv(N, 8)))
    G = pl.cdiv(N, B)
    N_pad = G * B

    f32 = jnp.float32
    x = x1.astype(f32).reshape(N, H, W)
    x = jnp.pad(x, ((0, N_pad - N), (0, H_pad - H), (0, 0)))
    # lane-pack batches: (G, H_pad, B*W) with lane index = b*W + w
    x = x.reshape(G, B, H_pad, W).transpose(0, 2, 1, 3).reshape(G, H_pad, B * W)

    # Batch-invariant prep, hoisted out of the per-step body (DMA'd into VMEM once: the
    # constant index_map means the blocks never change across the grid).
    col = _col_gather_mats(B, W, OW)                       # (KW, B*W, B*OW)
    roww = _row_weight_mats(weight, H, H_pad, OH)          # (KW, COUT*OH, H_pad)  weights folded
    bcol = jnp.repeat(bias.astype(f32), OH).reshape(COUT * OH, 1)
    x2_arr = jnp.asarray(x2, dtype=f32).reshape(1)

    flops = G * KW * 2 * (B * OW) * (H_pad * B * W + COUT * OH * H_pad)
    bytes_accessed = 4 * (x.size + col.size + roww.size + bcol.size + 1
                          + G * COUT * OH * B * OW)

    out_packed = pl.pallas_call(
        _conv_clamp_kernel,
        out_shape=jax.ShapeDtypeStruct((G, COUT * OH, B * OW), f32),
        grid=(G,),
        in_specs=[
            pl.BlockSpec((1, H_pad, B * W), lambda g: (g, 0, 0)),        # per-step batch block
            pl.BlockSpec((KW, B * W, B * OW), lambda g: (0, 0, 0)),      # constant, fetched once
            pl.BlockSpec((KW, COUT * OH, H_pad), lambda g: (0, 0, 0)),   # constant, fetched once
            pl.BlockSpec((COUT * OH, 1), lambda g: (0, 0)),              # constant, fetched once
            pl.BlockSpec(memory_space=pltpu.MemorySpace.SMEM),           # x2 scalar
        ],
        out_specs=pl.BlockSpec((1, COUT * OH, B * OW), lambda g: (g, 0, 0)),
        compiler_params=pltpu.CompilerParams(dimension_semantics=("parallel",)),
        cost_estimate=pl.CostEstimate(flops=flops, transcendentals=0,
                                      bytes_accessed=bytes_accessed),
    )(x, col, roww, bcol, x2_arr)

    # Layout plumbing back to NCHW (tiny wrapper-side reshape/transpose).
    out = out_packed.reshape(G, COUT, OH, B, OW).transpose(0, 3, 1, 2, 4)
    return out.reshape(N_pad, COUT, OH, OW)[:N]


def _reference(x1, x2, weight, bias):
    r = jax.lax.conv_general_dilated(
        x1.astype(jnp.float32), weight.astype(jnp.float32),
        window_strides=(STRIDE, STRIDE), padding=((PAD, PAD), (PAD, PAD)),
        dimension_numbers=("NCHW", "OIHW", "NCHW"),
        precision=jax.lax.Precision.HIGHEST)
    r = r + bias.reshape(1, COUT, 1, 1)
    r = jnp.maximum(r, MIN_VALUE)      # clamp_min(self.min_value)
    r = jnp.maximum(r, x2)             # clamp_min(x2)
    return jnp.minimum(r, MAX_VALUE)   # clamp_max(self.max_value)


if __name__ == "__main__":
    key = jax.random.PRNGKey(0)
    kw_, kb_, kx_ = jax.random.split(key, 3)
    weight = 0.1 * jax.random.normal(kw_, (COUT, 1, KH, KW), dtype=jnp.float32)
    bias = 0.1 * jax.random.normal(kb_, (COUT,), dtype=jnp.float32)

    # (N, H, W, x2): x2 = 1 matches the original module demo (clamp degenerates to 0.3);
    # x2 = 0 exercises the non-degenerate clamp band; case 3 exercises odd spatial sizes
    # (sublane padding, OH not a multiple of 8); case 4 exercises the multi-step grid and
    # padded-batch path with a fully lane-dense (128-wide) output.
    cases = [(2, 16, 16, 1.0), (2, 16, 16, 0.0), (5, 19, 19, 0.0), (34, 16, 16, 0.0)]
    for i, (N, H, W, x2) in enumerate(cases):
        x1 = jax.random.normal(jax.random.fold_in(kx_, i), (N, 1, H, W), dtype=jnp.float32)
        out = jax.block_until_ready(model_forward(x1, x2, weight, bias))
        ref = _reference(x1, x2, weight, bias)
        assert out.shape == ref.shape, (out.shape, ref.shape)
        err = float(jnp.max(jnp.abs(out - ref)))
        assert err < 1e-4, (N, H, W, x2, err)
    print("KERNEL_OK")
</pallas_src>

<mosaic_0001>
module attributes {stable_mosaic.version = 11 : i64} {
  func.func @_conv_clamp_kernel(%arg0: i32, %arg1: memref<1x16x32xf32, #tpu.memory_space<vmem>>, %arg2: memref<3x32x16xf32, #tpu.memory_space<vmem>>, %arg3: memref<3x24x16xf32, #tpu.memory_space<vmem>>, %arg4: memref<24x1xf32, #tpu.memory_space<vmem>>, %arg5: memref<1xf32, #tpu.memory_space<smem>>, %arg6: memref<1x24x16xf32, #tpu.memory_space<vmem>>) attributes {dimension_semantics = [#tpu.dimension_semantics<parallel>], iteration_bounds = array<i64: 1>, scalar_prefetch = 0 : i64, scratch_operands = 0 : i64, tpu.core_type = #tpu.core_type<tc>, window_params = [{transform_indices = @transform_0, window_bounds = array<i64: 1, 16, 32>}, {pipeline_mode = #tpu.pipeline_mode<synchronous>, transform_indices = @transform_1, window_bounds = array<i64: 3, 32, 16>}, {pipeline_mode = #tpu.pipeline_mode<synchronous>, transform_indices = @transform_2, window_bounds = array<i64: 3, 24, 16>}, {pipeline_mode = #tpu.pipeline_mode<synchronous>, transform_indices = @transform_3, window_bounds = array<i64: 24, 1>}, {transform_indices = @transform_4, window_bounds = array<i64: 1>}, {transform_indices = @transform_5, window_bounds = array<i64: 1, 24, 16>}]} {
    %c0 = arith.constant 0 : index
    %c0_0 = arith.constant 0 : index
    %c0_1 = arith.constant 0 : index
    %0 = vector.load %arg1[%c0, %c0_0, %c0_1] : memref<1x16x32xf32, #tpu.memory_space<vmem>>, vector<1x16x32xf32>
    %1 = vector.shape_cast %0 : vector<1x16x32xf32> to vector<16x32xf32>
    %c0_2 = arith.constant 0 : index
    %c0_3 = arith.constant 0 : index
    %c0_4 = arith.constant 0 : index
    %2 = vector.load %arg2[%c0_2, %c0_3, %c0_4] : memref<3x32x16xf32, #tpu.memory_space<vmem>>, vector<1x32x16xf32>
    %3 = vector.shape_cast %2 : vector<1x32x16xf32> to vector<32x16xf32>
    %cst = arith.constant dense<0.000000e+00> : vector<16x16xf32>
    %4 = tpu.matmul %1, %3, %cst {dimension_numbers = #tpu.dot_dimension_numbers<[1], [0], [0], [1], [0, 0, 1, 1], [], []>} : vector<16x32xf32>, vector<32x16xf32>, vector<16x16xf32> -> vector<16x16xf32>
    %c0_5 = arith.constant 0 : index
    %c0_6 = arith.constant 0 : index
    %c0_7 = arith.constant 0 : index
    %5 = vector.load %arg3[%c0_5, %c0_6, %c0_7] : memref<3x24x16xf32, #tpu.memory_space<vmem>>, vector<1x24x16xf32>
    %6 = vector.shape_cast %5 : vector<1x24x16xf32> to vector<24x16xf32>
    %cst_8 = arith.constant dense<0.000000e+00> : vector<24x16xf32>
    %7 = tpu.matmul %6, %4, %cst_8 {dimension_numbers = #tpu.dot_dimension_numbers<[1], [0], [0], [1], [0, 0, 1, 1], [], []>} : vector<24x16xf32>, vector<16x16xf32>, vector<24x16xf32> -> vector<24x16xf32>
    %c1 = arith.constant 1 : index
    %c0_9 = arith.constant 0 : index
    %c0_10 = arith.constant 0 : index
    %8 = vector.load %arg2[%c1, %c0_9, %c0_10] : memref<3x32x16xf32, #tpu.memory_space<vmem>>, vector<1x32x16xf32>
    %9 = vector.shape_cast %8 : vector<1x32x16xf32> to vector<32x16xf32>
    %cst_11 = arith.constant dense<0.000000e+00> : vector<16x16xf32>
    %10 = tpu.matmul %1, %9, %cst_11 {dimension_numbers = #tpu.dot_dimension_numbers<[1], [0], [0], [1], [0, 0, 1, 1], [], []>} : vector<16x32xf32>, vector<32x16xf32>, vector<16x16xf32> -> vector<16x16xf32>
    %c1_12 = arith.constant 1 : index
    %c0_13 = arith.constant 0 : index
    %c0_14 = arith.constant 0 : index
    %11 = vector.load %arg3[%c1_12, %c0_13, %c0_14] : memref<3x24x16xf32, #tpu.memory_space<vmem>>, vector<1x24x16xf32>
    %12 = vector.shape_cast %11 : vector<1x24x16xf32> to vector<24x16xf32>
    %cst_15 = arith.constant dense<0.000000e+00> : vector<24x16xf32>
    %13 = tpu.matmul %12, %10, %cst_15 {dimension_numbers = #tpu.dot_dimension_numbers<[1], [0], [0], [1], [0, 0, 1, 1], [], []>} : vector<24x16xf32>, vector<16x16xf32>, vector<24x16xf32> -> vector<24x16xf32>
    %14 = arith.addf %7, %13 : vector<24x16xf32>
    %c2 = arith.constant 2 : index
    %c0_16 = arith.constant 0 : index
    %c0_17 = arith.constant 0 : index
    %15 = vector.load %arg2[%c2, %c0_16, %c0_17] : memref<3x32x16xf32, #tpu.memory_space<vmem>>, vector<1x32x16xf32>
    %16 = vector.shape_cast %15 : vector<1x32x16xf32> to vector<32x16xf32>
    %cst_18 = arith.constant dense<0.000000e+00> : vector<16x16xf32>
    %17 = tpu.matmul %1, %16, %cst_18 {dimension_numbers = #tpu.dot_dimension_numbers<[1], [0], [0], [1], [0, 0, 1, 1], [], []>} : vector<16x32xf32>, vector<32x16xf32>, vector<16x16xf32> -> vector<16x16xf32>
    %c2_19 = arith.constant 2 : index
    %c0_20 = arith.constant 0 : index
    %c0_21 = arith.constant 0 : index
    %18 = vector.load %arg3[%c2_19, %c0_20, %c0_21] : memref<3x24x16xf32, #tpu.memory_space<vmem>>, vector<1x24x16xf32>
    %19 = vector.shape_cast %18 : vector<1x24x16xf32> to vector<24x16xf32>
    %cst_22 = arith.constant dense<0.000000e+00> : vector<24x16xf32>
    %20 = tpu.matmul %19, %17, %cst_22 {dimension_numbers = #tpu.dot_dimension_numbers<[1], [0], [0], [1], [0, 0, 1, 1], [], []>} : vector<24x16xf32>, vector<16x16xf32>, vector<24x16xf32> -> vector<24x16xf32>
    %21 = arith.addf %14, %20 : vector<24x16xf32>
    %c0_23 = arith.constant 0 : index
    %c0_24 = arith.constant 0 : index
    %22 = vector.load %arg4[%c0_23, %c0_24] : memref<24x1xf32, #tpu.memory_space<vmem>>, vector<24x1xf32>
    %23 = vector.broadcast %22 : vector<24x1xf32> to vector<24x16xf32>
    %24 = arith.addf %21, %23 : vector<24x16xf32>
    %c0_25 = arith.constant 0 : index
    %25 = memref.load %arg5[%c0_25] : memref<1xf32, #tpu.memory_space<smem>>
    %cst_26 = arith.constant 2.000000e-01 : f32
    %26 = arith.maximumf %cst_26, %25 : f32
    %27 = vector.broadcast %26 : f32 to vector<24x16xf32>
    %28 = arith.maximumf %24, %27 : vector<24x16xf32>
    %cst_27 = arith.constant 3.000000e-01 : f32
    %29 = vector.broadcast %cst_27 : f32 to vector<24x16xf32>
    %30 = arith.minimumf %28, %29 : vector<24x16xf32>
    %c0_28 = arith.constant 0 : index
    %c0_29 = arith.constant 0 : index
    %c0_30 = arith.constant 0 : index
    %31 = vector.load %arg6[%c0_28, %c0_29, %c0_30] : memref<1x24x16xf32, #tpu.memory_space<vmem>>, vector<1x24x16xf32>
    %32 = vector.shape_cast %31 : vector<1x24x16xf32> to vector<24x16xf32>
    %33 = vector.shape_cast %30 : vector<24x16xf32> to vector<1x24x16xf32>
    tpu.vector_store %arg6[%c0_28, %c0_29, %c0_30], %33 {strides = array<i32>} : memref<1x24x16xf32, #tpu.memory_space<vmem>>, vector<1x24x16xf32>,
    return
  }
  func.func @transform_0(%arg0: i32) -> (i32, i32, i32) {
    %c0_i32 = arith.constant 0 : i32
    %c0_i32_0 = arith.constant 0 : i32
    %c0_i32_1 = arith.constant 0 : i32
    return %arg0, %c0_i32, %c0_i32_0 : i32, i32, i32
  }
  func.func @transform_1(%arg0: i32) -> (i32, i32, i32) {
    %c0_i32 = arith.constant 0 : i32
    %c0_i32_0 = arith.constant 0 : i32
    %c0_i32_1 = arith.constant 0 : i32
    %c0_i32_2 = arith.constant 0 : i32
    return %c0_i32, %c0_i32_0, %c0_i32_1 : i32, i32, i32
  }
  func.func @transform_2(%arg0: i32) -> (i32, i32, i32) {
    %c0_i32 = arith.constant 0 : i32
    %c0_i32_0 = arith.constant 0 : i32
    %c0_i32_1 = arith.constant 0 : i32
    %c0_i32_2 = arith.constant 0 : i32
    return %c0_i32, %c0_i32_0, %c0_i32_1 : i32, i32, i32
  }
  func.func @transform_3(%arg0: i32) -> (i32, i32) {
    %c0_i32 = arith.constant 0 : i32
    %c0_i32_0 = arith.constant 0 : i32
    %c0_i32_1 = arith.constant 0 : i32
    return %c0_i32, %c0_i32_0 : i32, i32
  }
  func.func @transform_4(%arg0: i32) -> i32 {
    %c0_i32 = arith.constant 0 : i32
    %c0_i32_0 = arith.constant 0 : i32
    return %c0_i32 : i32
  }
  func.func @transform_5(%arg0: i32) -> (i32, i32, i32) {
    %c0_i32 = arith.constant 0 : i32
    %c0_i32_0 = arith.constant 0 : i32
    %c0_i32_1 = arith.constant 0 : i32
    return %arg0, %c0_i32, %c0_i32_0 : i32, i32, i32
  }
}

</mosaic_0001>

<bundles_post_ra>
// kernel: tpu_custom_call.1
= control target key start
LH: loop header
LB: loop body
LE: loop exit
PB: predicated region body
PF: predicated region fallthrough
CT: control target
= control target key end

     0   :  { %vm27_vm0 = vcmask 261120   ;;  %vm92_vm1 = vcmask 130048   ;;  %v311_v26 = vmov 0   ;;  %s451_s1 = inlined_call_operand.vmem [shape: f32[3,32,16], index: 1, kind: input, shape index: {}]   ;;  %s452_s0 = inlined_call_operand.vmem [shape: f32[1,16,32], index: 0, kind: input, shape index: {}]   ;;  %s453_s2 = inlined_call_operand.vmem [shape: f32[3,24,16], index: 2, kind: input, shape index: {}]   ;;  %s454_s3 = inlined_call_operand.vmem [shape: f32[24,1], index: 3, kind: input, shape index: {}]   ;;  %s455_s4 = inlined_call_operand.<no memory space> [shape: f32[1], index: 4, kind: input, shape index: {}]   ;;  %s456_s5 = inlined_call_operand.vmem [shape: f32[1,24,16], index: 5, kind: output, shape index: {}]  }
   0x1   :  { %v26_v0 = vld [vmem:[%s451_s1 + $0x18] sm:$0xff]  ;;  %v25_v1 = vld [vmem:[%s451_s1 + $0x10] sm:$0xff]  ;;  %v24_v4 = vld [vmem:[%s451_s1 + $0x8] sm:$0xff]  ;;  %309 = vset.pattern.permute.xlu0 %v311_v26  ;;  %310 = vset.pattern.permute.xlu1 %v311_v26 }
   0x2   :  { %v275_v2 = vld [vmem:[%s451_s1 + $0x38] sm:$0xff]  ;;  %46 = vmatpush.msra.mxu0 %v26_v0  ;;  %v274_v3 = vld [vmem:[%s451_s1 + $0x30] sm:$0xff]  ;;  %v273_v5 = vld [vmem:[%s451_s1 + $0x28] sm:$0xff] }
   0x3   :  { %299 = vmatpush.msra.mxu2 %v275_v2  ;;  %77 = vmatpush.msra.mxu1 %v275_v2  ;;  %v23_v6 = vld [vmem:[%s451_s1] sm:$0xff]  ;;  %v22_v9 = vld [vmem:[%s452_s0 + $0x8] sm:$0xff]  ;;  %v290_v10 = vld [vmem:[%s451_s1 + $0x58] sm:$0xff] }
   0x4   :  { %47 = vmatpush.msra.mxu0 %v25_v1  ;;  %v272_v7 = vld [vmem:[%s451_s1 + $0x20] sm:$0xff]  ;;  %v289_v11 = vld [vmem:[%s451_s1 + $0x50] sm:$0xff]  ;;  %v288_v12 = vld [vmem:[%s451_s1 + $0x48] sm:$0xff] }
   0x5   :  { %300 = vmatpush.msra.mxu2 %v274_v3  ;;  %78 = vmatpush.msra.mxu1 %v274_v3  ;;  %v21_v8 = vld [vmem:[%s452_s0] sm:$0xff]  ;;  %v278_v17 = vld [vmem:[%s453_s2 + $0x18] sm:$0xff]  ;;  %v58_v21 = vld [vmem:[%s453_s2 + $0x8] sm:$0xff]  ;;  %s312_s0 = smov 0.2  }
   0x6   :  { %48 = vmatpush.msra.mxu0 %v24_v4  ;;  %v287_v13 = vld [vmem:[%s451_s1 + $0x40] sm:$0xff]  ;;  %v280_v22 = vld [vmem:[%s453_s2 + $0x28] sm:$0xff]  ;;  %v59_v23 = vld [vmem:[%s453_s2 + $0x10] sm:$0xff]  ;;  %s255_s19 = smax.f32 %s312_s0, %s455_s4 }
   0x7   :  { %301 = vmatpush.msra.mxu2 %v273_v5  ;;  %79 = vmatpush.msra.mxu1 %v273_v5  ;;  %v57_v19 = vld [vmem:[%s453_s2] sm:$0xff]  ;;  %v234_v28 = vld [vmem:[%s454_s3 + $0x8] sm:$0xff]  ;;  %v235_v29 = vld [vmem:[%s454_s3 + $0x10] sm:$0xff]  ;;  %v256_v42 = vstv %s255_s19 }
   0x8   :  { %49 = vmatpush.msra.mxu0 %v23_v6  ;;  %v279_v20 = vld [vmem:[%s453_s2 + $0x20] sm:$0xff]  ;;  %248 = vperm.xlu1 %310, %v235_v29   ;;  %v293_v33 = vld [vmem:[%s453_s2 + $0x30] sm:$0xff]  ;;  %v294_v34 = vld [vmem:[%s453_s2 + $0x38] sm:$0xff] }
   0x9   :  { %302 = vmatpush.msra.mxu2 %v272_v7  ;;  %270 = vmatmul.msk.f32.vlgmr.msra.gmra.mxu0 %vm27_vm0, %v21_v8  ;;  %v233_v25 = vld [vmem:[%s454_s3] sm:$0xff] }
   0xa   :  { %277 = vmatmul.msk.f32.vlgmr.msra.gmra.mxu2 %vm27_vm0, %v22_v9  ;;  %80 = vmatpush.msra.mxu1 %v272_v7  ;;  %v295_v35 = vld [vmem:[%s453_s2 + $0x40] sm:$0xff] }
   0xb   :  { %276 = vmatmul.msk.f32.vlgmr.msra.gmra.mxu1 %vm27_vm0, %v21_v8  ;;  %180 = vmatpush.msrb.mxu0 %v290_v10 }
   0xc   :  { %238 = vperm.xlu0 %309, %v233_v25  }
   0xd   :  { %181 = vmatpush.msrb.mxu0 %v289_v11 }
   0xf   :  { %182 = vmatpush.msrb.mxu0 %v288_v12 }
  0x11   :  { %271 = vmatmul.msk.f32.gmra.mxu0 %vm27_vm0, %v22_v9 }
  0x12   :  { %183 = vmatpush.msrb.mxu0 %v287_v13 }
  0x14   :  { %243 = vperm.xlu0 %309, %v234_v28  }
  0x19   :  { %291 = vmatmul.msk.f32.vlgmr.msrb.gmra.mxu0 %vm27_vm0, %v21_v8 }
  0x7a   :  { %v249_v56 = vpop.permute.xlu1 %248 }
  0x7e   :  { %v239_v37 = vpop.permute.xlu0 %238 }
  0x86   :  { %v51_v14 = vpop.f32.mrf.mxu0  ;;  %v244_v48 = vpop.permute.xlu0 %243 }
  0x88   :  { %v82_v16 = vpop.f32.mrf.mxu1 }
  0x8d   :  { %v85_v15 = vpop.f32.mrf.mxu2 }
  0x8e   :  { %116 = vmatpush.msrb.mxu2 %v85_v15  ;;  %v54_v18 = vpop.f32.mrf.mxu0 }
  0x8f   :  { %151 = vmatpush.msra.mxu3 %v54_v18 }
  0x90   :  { %117 = vmatpush.msrb.mxu2 %v82_v16 }
  0x91   :  { %281 = vmatmul.msk.f32.vlgmr.msrb.gmra.mxu2 %vm92_vm1, %v278_v17  ;;  %152 = vmatpush.msra.mxu3 %v51_v14 }
  0x92   :  { %284 = vmatmul.msk.f32.vlgmr.msra.gmra.mxu3 %vm92_vm1, %v57_v19 }
  0x93   :  { %303 = vmatpush.msrb.mxu3 %v290_v10 }
  0x95   :  { %304 = vmatpush.msrb.mxu3 %v289_v11 }
  0x96   :  { %v185_v32 = vpop.f32.mrf.mxu0 }
  0x97   :  { %305 = vmatpush.msrb.mxu3 %v288_v12 }
  0x99   :  { %282 = vmatmul.msk.f32.gmra.mxu2 %vm92_vm1, %v279_v20  ;;  %306 = vmatpush.msrb.mxu3 %v287_v13 }
  0x9a   :  { %285 = vmatmul.msk.f32.gmra.mxu3 %vm92_vm1, %v58_v21 }
  0xa1   :  { %283 = vmatmul.msk.f32.gmra.mxu2 %vm92_vm1, %v280_v22 }
  0xa2   :  { %286 = vmatmul.msk.f32.gmra.mxu3 %vm92_vm1, %v59_v23 }
  0xaa   :  { %292 = vmatmul.msk.f32.vlgmr.msrb.gmra.mxu3 %vm27_vm0, %v22_v9 }
 0x114   :  { %v119_v36 = vpop.f32.mrf.mxu2 }
 0x115   :  { %v154_v24 = vpop.f32.mrf.mxu3 }
 0x116   :  { %v155_v38 = vadd.f32 %v154_v24, %v119_v36 }
 0x11c   :  { %v122_v41 = vpop.f32.mrf.mxu2 }
 0x11d   :  { %v157_v27 = vpop.f32.mrf.mxu3 }
 0x11e   :  { %v158_v45 = vadd.f32 %v157_v27, %v122_v41 }
 0x124   :  { %v125_v51 = vpop.f32.mrf.mxu2 }
 0x125   :  { %v160_v30 = vpop.f32.mrf.mxu3 }
 0x126   :  { %v161_v53 = vadd.f32 %v160_v30, %v125_v51 }
 0x12d   :  { %v188_v31 = vpop.f32.mrf.mxu3 }
 0x12e   :  { %218 = vmatpush.msrb.mxu1 %v188_v31 }
 0x130   :  { %219 = vmatpush.msrb.mxu1 %v185_v32 }
 0x131   :  { %296 = vmatmul.msk.f32.vlgmr.msrb.gmra.mxu1 %vm92_vm1, %v293_v33 }
 0x139   :  { %297 = vmatmul.msk.f32.gmra.mxu1 %vm92_vm1, %v294_v34 }
 0x141   :  { %298 = vmatmul.msk.f32.gmra.mxu1 %vm92_vm1, %v295_v35 }
 0x1ae   :  { %v221_v39 = vpop.f32.mrf.mxu1 }
 0x1af   :  { %v230_v40 = vadd.f32 %v221_v39, %v155_v38 }
 0x1b1   :  { %v251_v43 = vadd.f32 %v239_v37, %v230_v40 }
 0x1b3   :  { %v257_v44 = vmax.f32 %v251_v43, %v256_v42 }
 0x1b5   :  { %v260_v46 = vmin.f32 %v257_v44, 0.3 }
 0x1b6   :  { %v224_v47 = vpop.f32.mrf.mxu1 }
 0x1b7   :  { %263 = vst.msk [vmem:[%s456_s5] sm:$0xff] %vm92_vm1, %v260_v46  ;;  %v231_v49 = vadd.f32 %v224_v47, %v158_v45 }
 0x1b9   :  { %v252_v50 = vadd.f32 %v244_v48, %v231_v49 }
 0x1bb   :  { %v258_v52 = vmax.f32 %v252_v50, %v256_v42 }
 0x1bd   :  { %v261_v54 = vmin.f32 %v258_v52, 0.3 }
 0x1be   :  { %v227_v55 = vpop.f32.mrf.mxu1 }
 0x1bf   :  { %264 = vst.msk [vmem:[%s456_s5 + $0x8] sm:$0xff] %vm92_vm1, %v261_v54  ;;  %v232_v57 = vadd.f32 %v227_v55, %v161_v53 }
 0x1c1   :  { %v253_v58 = vadd.f32 %v249_v56, %v232_v57 }
 0x1c3   :  { %v259_v59 = vmax.f32 %v253_v58, %v256_v42 }
 0x1c5   :  { %v262_v60 = vmin.f32 %v259_v59, 0.3 }
 0x1c7   :  { %265 = vst.msk [vmem:[%s456_s5 + $0x10] sm:$0xff] %vm92_vm1, %v262_v60 }

</bundles_post_ra>
